<compile_context>
chip_gen: v5e
topology: v5e:2x2
jax: 0.10.0
libtpu: 0.0.40
codegen_flags: <defaults>
</compile_context>

<pallas_src>
import jax
import jax.numpy as jnp
from jax.experimental import pallas as pl
from jax.experimental.pallas import tpu as pltpu


# ----- "Config" values from the original module (synthetic, small) -----------
OUT_EMB_DIM = 256          # Config.out_emb_dim
HIDDEN = OUT_EMB_DIM // 2  # Config.out_emb_dim // 2  (== 128, one lane tile)


# ----------------------------- Pallas kernel ---------------------------------
def _tte_kernel(g_ref, r_ref, wg_ref, wr_ref, small_ref, o_ref):
    """Fused: (mean-pool + fusion encoder + proj-1) as two folded matmuls,
    then ReLU, then proj-2 (HIDDEN -> 1) as a VPU multiply + lane reduce."""
    # Folded stage: h = relu(x_flat @ W_tall + b_fold).  W_tall already
    # contains We @ W1 and the 1/L pooling scale, tiled along the free
    # [B, L*F] flattening of the sequence inputs, so the sum over the
    # sequence happens inside the f32 MXU accumulation for free.
    h = (jnp.dot(g_ref[...].astype(jnp.bfloat16), wg_ref[...],
                 preferred_element_type=jnp.float32)
         + jnp.dot(r_ref[...].astype(jnp.bfloat16), wr_ref[...],
                   preferred_element_type=jnp.float32)
         + small_ref[0:1, :])                               # [B, HIDDEN] f32
    h = jnp.maximum(h, 0.0)                                 # ReLU (VPU, f32)

    # proj layer 2 (HIDDEN -> 1): VPU multiply + lane reduction instead of an
    # N=1 MXU matmul (avoids a lane-padded [128,1] operand, frees the MXU).
    pred = jnp.sum(h * small_ref[1:2, :], axis=-1, keepdims=True)   # [B, 1]

    # Lane-dense store: broadcast into the [B, HIDDEN] output slab (unmasked
    # full-lane vst); b2 is added via the packed row; wrapper slices column 0.
    o_ref[...] = (jnp.broadcast_to(pred, o_ref.shape)
                  + small_ref[2:3, :]).astype(o_ref.dtype)


# ------------------------------- wrapper --------------------------------------
def tte_forward(grid_data, road_data, fused_params):
    """TTE.forward(grid_data, road_data) -> pred of shape [B, 1]."""
    # TODO(synk): pretraining_model.tte_test is an external, undefined network;
    # stood in with a deterministic mean-pool + linear fusion encoder, which
    # (being linear) is folded into proj layer 1 at parameter-init time.
    wg_tall, wr_tall, small = fused_params
    B, L, Fg = grid_data.shape
    Fr = road_data.shape[-1]

    # Free, metadata-only reshapes: [B, L, F] -> [B, L*F] lane-dense MXU LHS.
    g_flat = grid_data.reshape(B, L * Fg)
    r_flat = road_data.reshape(B, L * Fr)

    # Keep sublane-dense blocks: pad batch to a multiple of 8 if needed.
    Bp = ((B + 7) // 8) * 8
    if Bp != B:
        g_flat = jnp.pad(g_flat, ((0, Bp - B), (0, 0)))
        r_flat = jnp.pad(r_flat, ((0, Bp - B), (0, 0)))

    flops = 2 * Bp * (L * Fg + L * Fr) * HIDDEN + 4 * Bp * HIDDEN
    operands = (g_flat, r_flat, wg_tall, wr_tall, small)
    bytes_accessed = (sum(int(a.size) * a.dtype.itemsize for a in operands)
                      + Bp * HIDDEN * 4)

    out = pl.pallas_call(
        _tte_kernel,
        out_shape=jax.ShapeDtypeStruct((Bp, HIDDEN), jnp.float32),
        grid_spec=pl.GridSpec(
            grid=(1,),  # tiny problem: single step, full-array blocks in VMEM
            in_specs=[
                pl.BlockSpec(g_flat.shape, lambda i: (0, 0)),
                pl.BlockSpec(r_flat.shape, lambda i: (0, 0)),
                pl.BlockSpec(wg_tall.shape, lambda i: (0, 0)),
                pl.BlockSpec(wr_tall.shape, lambda i: (0, 0)),
                pl.BlockSpec(small.shape, lambda i: (0, 0)),
            ],
            out_specs=pl.BlockSpec((Bp, HIDDEN), lambda i: (0, 0)),
        ),
        compiler_params=pltpu.CompilerParams(
            dimension_semantics=("arbitrary",)),
        cost_estimate=pl.CostEstimate(
            flops=flops, transcendentals=0, bytes_accessed=bytes_accessed),
    )(g_flat, r_flat, wg_tall, wr_tall, small)

    return out[:B, :1]                                      # [B, 1]


# ------------------------- deterministic parameter init ----------------------
def init_params(key, grid_feat_dim, road_feat_dim, seq_len):
    k0, k1, k2, k3, k4 = jax.random.split(key, 5)
    # Stand-in fusion encoder weights (mean-pool over L + Linear(Fg+Fr, D)),
    # kept pre-split per input so no concat is ever materialized.
    weg = jax.random.normal(k0, (grid_feat_dim, OUT_EMB_DIM), jnp.float32) * 0.05
    wer = jax.random.normal(k1, (road_feat_dim, OUT_EMB_DIM), jnp.float32) * 0.05
    be = jnp.zeros((1, OUT_EMB_DIM), jnp.float32)
    # proj head: Linear(D, D//2) -> ReLU -> Linear(D//2, 1)
    w1 = jax.random.normal(k2, (OUT_EMB_DIM, HIDDEN), jnp.float32) / OUT_EMB_DIM ** 0.5
    b1 = jax.random.normal(k3, (1, HIDDEN), jnp.float32) * 0.01
    w2_row = jax.random.normal(k4, (1, HIDDEN), jnp.float32) / HIDDEN ** 0.5
    b2 = jnp.zeros((1, 1), jnp.float32)
    raw = (weg, wer, be, w1, b1, w2_row, b2)

    # One-time algebraic fold (legal only because the stand-in encoder is
    # linear — no nonlinearity between it and proj-1):
    #   W_fold = We @ W1           b_fold = be @ W1 + b1
    # The 1/L mean scale is folded too, and W_fold/L is tiled L times along K
    # so the kernel consumes the free [B, L*F] flattening of the inputs.
    fold_g = (weg @ w1) / seq_len                           # [Fg, HIDDEN] f32
    fold_r = (wer @ w1) / seq_len                           # [Fr, HIDDEN] f32
    wg_tall = jnp.tile(fold_g, (seq_len, 1)).astype(jnp.bfloat16)  # [L*Fg, H]
    wr_tall = jnp.tile(fold_r, (seq_len, 1)).astype(jnp.bfloat16)  # [L*Fr, H]
    b_fold = be @ w1 + b1                                   # [1, HIDDEN] f32
    # Pack ALL small f32 operands into one block -> a single DMA:
    #   row 0: b_fold, row 1: w2 row, row 2: b2 broadcast across lanes.
    small = jnp.concatenate(
        [b_fold, w2_row, jnp.broadcast_to(b2, (1, HIDDEN))], axis=0)  # [3, H]
    fused = (wg_tall, wr_tall, small)
    return fused, raw


# ----------------------------------- main -------------------------------------
if __name__ == "__main__":
    key = jax.random.PRNGKey(0)
    kg, kr, kp = jax.random.split(key, 3)

    B, L, Fg, Fr = 8, 8, 16, 16
    grid_data = jax.random.normal(kg, (B, L, Fg), jnp.float32)
    road_data = jax.random.normal(kr, (B, L, Fr), jnp.float32)
    fused, raw = init_params(kp, Fg, Fr, L)

    pred = tte_forward(grid_data, road_data, fused)
    pred = jax.block_until_ready(pred)
    assert pred.shape == (B, 1)

    # Reference 1: identical folded math in plain JAX (exact kernel semantics).
    wg_tall, wr_tall, small = fused
    b_fold, w2_row_p, b2_sc = small[0:1, :], small[1:2, :], small[2:3, 0:1]
    g_flat = grid_data.reshape(B, L * Fg).astype(jnp.bfloat16)
    r_flat = road_data.reshape(B, L * Fr).astype(jnp.bfloat16)
    h = jnp.maximum(
        jnp.dot(g_flat, wg_tall, preferred_element_type=jnp.float32)
        + jnp.dot(r_flat, wr_tall, preferred_element_type=jnp.float32)
        + b_fold, 0.0)
    ref_fold = jnp.sum(h * w2_row_p, axis=-1, keepdims=True) + b2_sc
    assert jnp.allclose(pred, ref_fold, atol=2e-3, rtol=2e-3)

    # Reference 2: original layer-by-layer f32 math (mean-pool -> fusion
    # encoder -> Linear -> ReLU -> Linear(·,1)); verifies the algebraic fold
    # preserves the module's forward semantics up to bf16 rounding order.
    weg, wer, be, w1, b1, w2_row, b2 = raw
    gp, rp = grid_data.mean(1), road_data.mean(1)
    fusion = gp @ weg + rp @ wer + be
    h2 = jnp.maximum(fusion @ w1 + b1, 0.0)
    ref_layer = jnp.sum(h2 * w2_row, axis=-1, keepdims=True) + b2
    assert jnp.allclose(pred, ref_layer, atol=3e-2, rtol=3e-2)

    print("KERNEL_OK")
</pallas_src>

<mosaic_0001>
module attributes {stable_mosaic.version = 11 : i64} {
  func.func @_tte_kernel(%arg0: i32, %arg1: memref<8x128xf32, #tpu.memory_space<vmem>>, %arg2: memref<8x128xf32, #tpu.memory_space<vmem>>, %arg3: memref<128x128xbf16, #tpu.memory_space<vmem>>, %arg4: memref<128x128xbf16, #tpu.memory_space<vmem>>, %arg5: memref<3x128xf32, #tpu.memory_space<vmem>>, %arg6: memref<8x128xf32, #tpu.memory_space<vmem>>) attributes {dimension_semantics = [#tpu.dimension_semantics<arbitrary>], iteration_bounds = array<i64: 1>, scalar_prefetch = 0 : i64, scratch_operands = 0 : i64, tpu.core_type = #tpu.core_type<tc>, window_params = [{pipeline_mode = #tpu.pipeline_mode<synchronous>, transform_indices = @transform_0, window_bounds = array<i64: 8, 128>}, {pipeline_mode = #tpu.pipeline_mode<synchronous>, transform_indices = @transform_1, window_bounds = array<i64: 8, 128>}, {pipeline_mode = #tpu.pipeline_mode<synchronous>, transform_indices = @transform_2, window_bounds = array<i64: 128, 128>}, {pipeline_mode = #tpu.pipeline_mode<synchronous>, transform_indices = @transform_3, window_bounds = array<i64: 128, 128>}, {pipeline_mode = #tpu.pipeline_mode<synchronous>, transform_indices = @transform_4, window_bounds = array<i64: 3, 128>}, {pipeline_mode = #tpu.pipeline_mode<synchronous>, transform_indices = @transform_5, window_bounds = array<i64: 8, 128>}]} {
    %c0 = arith.constant 0 : index
    %c0_0 = arith.constant 0 : index
    %0 = vector.load %arg1[%c0, %c0_0] : memref<8x128xf32, #tpu.memory_space<vmem>>, vector<8x128xf32>
    %1 = arith.truncf %0 : vector<8x128xf32> to vector<8x128xbf16>
    %c0_1 = arith.constant 0 : index
    %c0_2 = arith.constant 0 : index
    %2 = vector.load %arg3[%c0_1, %c0_2] : memref<128x128xbf16, #tpu.memory_space<vmem>>, vector<128x128xbf16>
    %cst = arith.constant dense<0.000000e+00> : vector<8x128xf32>
    %3 = tpu.matmul %1, %2, %cst {dimension_numbers = #tpu.dot_dimension_numbers<[1], [0], [0], [1], [0, 0, 1, 1], [], []>} : vector<8x128xbf16>, vector<128x128xbf16>, vector<8x128xf32> -> vector<8x128xf32>
    %c0_3 = arith.constant 0 : index
    %c0_4 = arith.constant 0 : index
    %4 = vector.load %arg2[%c0_3, %c0_4] : memref<8x128xf32, #tpu.memory_space<vmem>>, vector<8x128xf32>
    %5 = arith.truncf %4 : vector<8x128xf32> to vector<8x128xbf16>
    %c0_5 = arith.constant 0 : index
    %c0_6 = arith.constant 0 : index
    %6 = vector.load %arg4[%c0_5, %c0_6] : memref<128x128xbf16, #tpu.memory_space<vmem>>, vector<128x128xbf16>
    %cst_7 = arith.constant dense<0.000000e+00> : vector<8x128xf32>
    %7 = tpu.matmul %5, %6, %cst_7 {dimension_numbers = #tpu.dot_dimension_numbers<[1], [0], [0], [1], [0, 0, 1, 1], [], []>} : vector<8x128xbf16>, vector<128x128xbf16>, vector<8x128xf32> -> vector<8x128xf32>
    %8 = arith.addf %3, %7 : vector<8x128xf32>
    %c0_8 = arith.constant 0 : index
    %c0_9 = arith.constant 0 : index
    %9 = vector.load %arg5[%c0_8, %c0_9] : memref<3x128xf32, #tpu.memory_space<vmem>>, vector<1x128xf32>
    %10 = vector.broadcast %9 : vector<1x128xf32> to vector<8x128xf32>
    %11 = arith.addf %8, %10 : vector<8x128xf32>
    %cst_10 = arith.constant 0.000000e+00 : f32
    %12 = vector.broadcast %cst_10 : f32 to vector<8x128xf32>
    %13 = arith.maximumf %11, %12 : vector<8x128xf32>
    %c1 = arith.constant 1 : index
    %c0_11 = arith.constant 0 : index
    %14 = vector.load %arg5[%c1, %c0_11] : memref<3x128xf32, #tpu.memory_space<vmem>>, vector<1x128xf32>
    %15 = vector.broadcast %14 : vector<1x128xf32> to vector<8x128xf32>
    %16 = arith.mulf %13, %15 : vector<8x128xf32>
    %cst_12 = arith.constant dense<0.000000e+00> : vector<8xf32>
    %17 = vector.multi_reduction <add>, %16, %cst_12 [1] : vector<8x128xf32> to vector<8xf32>
    %18 = vector.shape_cast %17 : vector<8xf32> to vector<8x1xf32>
    %19 = vector.shape_cast %18 : vector<8x1xf32> to vector<8x1xf32>
    %20 = vector.broadcast %19 : vector<8x1xf32> to vector<8x128xf32>
    %c2 = arith.constant 2 : index
    %c0_13 = arith.constant 0 : index
    %21 = vector.load %arg5[%c2, %c0_13] : memref<3x128xf32, #tpu.memory_space<vmem>>, vector<1x128xf32>
    %22 = vector.broadcast %21 : vector<1x128xf32> to vector<8x128xf32>
    %23 = arith.addf %20, %22 : vector<8x128xf32>
    %c0_14 = arith.constant 0 : index
    %c0_15 = arith.constant 0 : index
    %24 = vector.load %arg6[%c0_14, %c0_15] : memref<8x128xf32, #tpu.memory_space<vmem>>, vector<8x128xf32>
    tpu.vector_store %arg6[%c0_14, %c0_15], %23 {strides = array<i32>} : memref<8x128xf32, #tpu.memory_space<vmem>>, vector<8x128xf32>,
    return
  }
  func.func @transform_0(%arg0: i32) -> (i32, i32) {
    %c0_i32 = arith.constant 0 : i32
    %c0_i32_0 = arith.constant 0 : i32
    %c0_i32_1 = arith.constant 0 : i32
    return %c0_i32, %c0_i32_0 : i32, i32
  }
  func.func @transform_1(%arg0: i32) -> (i32, i32) {
    %c0_i32 = arith.constant 0 : i32
    %c0_i32_0 = arith.constant 0 : i32
    %c0_i32_1 = arith.constant 0 : i32
    return %c0_i32, %c0_i32_0 : i32, i32
  }
  func.func @transform_2(%arg0: i32) -> (i32, i32) {
    %c0_i32 = arith.constant 0 : i32
    %c0_i32_0 = arith.constant 0 : i32
    %c0_i32_1 = arith.constant 0 : i32
    return %c0_i32, %c0_i32_0 : i32, i32
  }
  func.func @transform_3(%arg0: i32) -> (i32, i32) {
    %c0_i32 = arith.constant 0 : i32
    %c0_i32_0 = arith.constant 0 : i32
    %c0_i32_1 = arith.constant 0 : i32
    return %c0_i32, %c0_i32_0 : i32, i32
  }
  func.func @transform_4(%arg0: i32) -> (i32, i32) {
    %c0_i32 = arith.constant 0 : i32
    %c0_i32_0 = arith.constant 0 : i32
    %c0_i32_1 = arith.constant 0 : i32
    return %c0_i32, %c0_i32_0 : i32, i32
  }
  func.func @transform_5(%arg0: i32) -> (i32, i32) {
    %c0_i32 = arith.constant 0 : i32
    %c0_i32_0 = arith.constant 0 : i32
    %c0_i32_1 = arith.constant 0 : i32
    return %c0_i32, %c0_i32_0 : i32, i32
  }
}

</mosaic_0001>

<bundles_post_ra>
// kernel: tpu_custom_call.1
= control target key start
LH: loop header
LB: loop body
LE: loop exit
PB: predicated region body
PF: predicated region fallthrough
CT: control target
= control target key end

     0   :  { %10 = vsyncpa [#allocation3], 0  ;;  %s582_s0 = inlined_call_operand.hbm [shape: f32[8,128], index: 0, kind: input, shape index: {}]   ;;  %s583_s1 = inlined_call_operand.hbm [shape: f32[8,128], index: 1, kind: input, shape index: {}]   ;;  %s584_s2 = inlined_call_operand.hbm [shape: bf16[128,128], index: 2, kind: input, shape index: {}]   ;;  %s585_s3 = inlined_call_operand.hbm [shape: bf16[128,128], index: 3, kind: input, shape index: {}]   ;;  %s586_s4 = inlined_call_operand.hbm [shape: f32[3,128], index: 4, kind: input, shape index: {}]   ;;  %s587_s5 = inlined_call_operand.hbm [shape: f32[8,128], index: 5, kind: output, shape index: {}]  }
   0x1   :  { %11 = vsyncpa [#allocation6], 0 }
   0x2   :  { %12 = vsyncpa [#allocation9], 0  ;;  %s30_s20 = sshll.u32 %s583_s1, 4  ;;  %s31_s20 = int_to_ptr.hbm [resolvable:$true] %s30_s20 }
   0x3   :  { %13 = vsyncpa [#allocation4], 0  ;;  %s526_s21 = smov [#allocation5]   ;;  %s53_s25 = sshll.u32 %s585_s3, 4  ;;  %s54_s25 = int_to_ptr.hbm [resolvable:$true] %s53_s25 }
   0x4   :  { %s32_s22 = sshll.u32 %s526_s21, 4  ;;  %s527_s26 = smov [#allocation8]   ;;  %s33_s22 = int_to_ptr.vmem [resolvable:$true] %s32_s22 }
   0x5   :  { %35 = dma.hbm_to_vmem [thread:$0]  %s31_s20, 128, %s33_s22, [#allocation6]  }
   0x6   :  { %s55_s27 = sshll.u32 %s527_s26, 4  ;;  %s19_s30 = sshll.u32 %s582_s0, 4  ;;  %s56_s27 = int_to_ptr.vmem [resolvable:$true] %s55_s27  ;;  %s20_s30 = int_to_ptr.hbm [resolvable:$true] %s19_s30 }
   0x7   :  { %s528_s1 = smov 64   ;;  %s529_s6 = smov 4  }
   0x8   :  { %61 = dma.hbm_to_vmem [thread:$0]  %s54_s25, 1024, %s56_s27, [#allocation9], %s528_s1, %s528_s1, %s529_s6  }
   0x9   :  { %s40_s9 = sshll.u32 %s584_s2, 4  ;;  %s530_s10 = smov [#allocation2]   ;;  %s41_s9 = int_to_ptr.hbm [resolvable:$true] %s40_s9 }
   0xa   :  { %s21_s11 = sshll.u32 %s530_s10, 4  ;;  %s531_s3 = smov [#allocation7]   ;;  %s22_s11 = int_to_ptr.vmem [resolvable:$true] %s21_s11 }
   0xb   :  { %24 = dma.hbm_to_vmem [thread:$0]  %s20_s30, 128, %s22_s11, [#allocation3]  }
   0xc   :  { %s42_s12 = sshll.u32 %s531_s3, 4  ;;  %s67_s0 = sshll.u32 %s586_s4, 4  ;;  %s43_s12 = int_to_ptr.vmem [resolvable:$true] %s42_s12  ;;  %s68_s0 = int_to_ptr.hbm [resolvable:$true] %s67_s0 }
   0xd   :  { %48 = dma.hbm_to_vmem [thread:$0]  %s41_s9, 1024, %s43_s12, [#allocation6], %s528_s1, %s528_s1, %s529_s6  }
   0xe   :  { %s532_s15 = smov [#allocation10]  }
   0xf   :  { %s69_s16 = sshll.u32 %s532_s15, 4  ;;  %s70_s16 = int_to_ptr.vmem [resolvable:$true] %s69_s16 }
  0x10   :  { %72 = dma.hbm_to_vmem [thread:$0]  %s68_s0, 64, %s70_s16, [#allocation9]  }
  0x11   :  { %518 = dma.done.wait [#allocation3], 128  }
  0x12   :  { %519 = vsyncadd [#allocation3], 4294967168 }
  0x13   :  { %520 = dma.done.wait [#allocation6], 1152  }
  0x14   :  { %521 = vsyncadd [#allocation6], 4294966144 }
  0x15   :  { %522 = dma.done.wait [#allocation9], 1088  }
  0x16   :  { %523 = vsyncadd [#allocation9], 4294966208  ;;  %v362_v0 = vld [vmem:[#allocation8 + $0x38] sm:$0xff]  ;;  %v361_v2 = vld [vmem:[#allocation8 + $0x30] sm:$0xff]  ;;  %s533_s2 = smov [#allocation11]   ;;  %s271_s19 = sshll.u32 %s587_s5, 4  ;;  %s272_s19 = int_to_ptr.hbm [resolvable:$true] %s271_s19 }
  0x17   :  { %v354_v1 = vld [vmem:[#allocation7 + $0x38] sm:$0xff]  ;;  %177 = vmatpush.bf16.msra.mxu0 %v362_v0  ;;  %v353_v3 = vld [vmem:[#allocation7 + $0x30] sm:$0xff]  ;;  %v360_v4 = vld [vmem:[#allocation8 + $0x28] sm:$0xff]  ;;  %s269_s4 = sshll.u32 %s533_s2, 4  ;;  %s270_s4 = int_to_ptr.vmem [resolvable:$true] %s269_s4 }
  0x18   :  { %238 = vmatpush.bf16.msra.mxu1 %v354_v1  ;;  %v352_v5 = vld [vmem:[#allocation7 + $0x28] sm:$0xff]  ;;  %v359_v6 = vld [vmem:[#allocation8 + $0x20] sm:$0xff]  ;;  %v358_v8 = vld [vmem:[#allocation8 + $0x18] sm:$0xff] }
  0x19   :  { %v351_v7 = vld [vmem:[#allocation7 + $0x20] sm:$0xff]  ;;  %v350_v9 = vld [vmem:[#allocation7 + $0x18] sm:$0xff]  ;;  %v357_v10 = vld [vmem:[#allocation8 + $0x10] sm:$0xff] }
  0x1a   :  { %v349_v11 = vld [vmem:[#allocation7 + $0x10] sm:$0xff]  ;;  %v356_v12 = vld [vmem:[#allocation8 + $0x8] sm:$0xff]  ;;  %v355_v14 = vld [vmem:[#allocation8] sm:$0xff] }
  0x1b   :  { %178 = vmatpush.bf16.msra.mxu0 %v361_v2  ;;  %v348_v13 = vld [vmem:[#allocation7 + $0x8] sm:$0xff]  ;;  %v347_v15 = vld [vmem:[#allocation7] sm:$0xff]  ;;  %v111_v16 = vld [vmem:[#allocation5] sm:$0xff] }
  0x1c   :  { %239 = vmatpush.bf16.msra.mxu1 %v353_v3  ;;  %v93_v17 = vld [vmem:[#allocation2] sm:$0xff]  ;;  %v112_v18 = vpack.c.bf16 %v111_v16, %v111_v16  ;;  %v371_v20 = vld [vmem:[#allocation10] ss:$0 sm:$0xff]  ;;  %v372_v25 = vld [vmem:[#allocation10 + $0x1] ss:$0 sm:$0xff] }
  0x1d   :  { %v94_v19 = vpack.c.bf16 %v93_v17, %v93_v17  ;;  %v373_v30 = vld [vmem:[#allocation10 + $0x2] ss:$0 sm:$0xff] }
  0x1f   :  { %179 = vmatpush.bf16.msra.mxu0 %v360_v4 }
  0x20   :  { %240 = vmatpush.bf16.msra.mxu1 %v352_v5 }
  0x23   :  { %180 = vmatpush.bf16.msra.mxu0 %v359_v6 }
  0x24   :  { %241 = vmatpush.bf16.msra.mxu1 %v351_v7 }
  0x27   :  { %181 = vmatpush.bf16.msra.mxu0 %v358_v8 }
  0x28   :  { %242 = vmatpush.bf16.msra.mxu1 %v350_v9 }
  0x2b   :  { %182 = vmatpush.bf16.msra.mxu0 %v357_v10 }
  0x2c   :  { %243 = vmatpush.bf16.msra.mxu1 %v349_v11 }
  0x2f   :  { %183 = vmatpush.bf16.msra.mxu0 %v356_v12 }
  0x30   :  { %244 = vmatpush.bf16.msra.mxu1 %v348_v13 }
  0x33   :  { %184 = vmatpush.bf16.msra.mxu0 %v355_v14 }
  0x34   :  { %245 = vmatpush.bf16.msra.mxu1 %v347_v15 }
  0x36   :  { %185 = vmatmul.bf16.vlgmr.msra.gmra.mxu0 %v112_v18 }
  0x37   :  { %246 = vmatmul.bf16.vlgmr.msra.gmra.mxu1 %v94_v19 }
  0xb3   :  { %v186_v21 = vpop.f32.mrf.mxu0 }
  0xb4   :  { %v247_v22 = vpop.f32.mrf.mxu1 }
  0xb5   :  { %v248_v23 = vadd.f32 %v247_v22, %v186_v21 }
  0xb7   :  { %v253_v24 = vadd.f32 %v371_v20, %v248_v23 }
  0xb9   :  { %v254_v26 = vmax.f32 %v253_v24, 0.0 }
  0xbb   :  { %v257_v27 = vmul.f32 %v372_v25, %v254_v26  ;;  %v188_v28 = vpop.f32.mrf.mxu0 }
  0xbc   :  { %v249_v29 = vpop.f32.mrf.mxu1 }
  0xbd   :  { %258 = vadd.xlane.f32.xlu0 %v257_v27 }
 0x130   :  { %v259_v31 = vpop.xlane.xlu0 %258 }
 0x131   :  { %v262_v32 = vadd.f32 %v373_v30, %v259_v31 }
 0x133   :  { %263 = vst [vmem:[#allocation11] sm:$0xff] %v262_v32 }
 0x134   :  { %274 = dma.vmem_to_hbm [thread:$0]  %s270_s4, 128, %s272_s19, [#allocation4]  }
 0x135   :  { %524 = dma.done.wait [#allocation4], 128  }
 0x136   :  { %525 = vsyncadd [#allocation4], 4294967168 }
 0x137   :  { %279 = vsyncpa [#allocation3], 1 }
 0x138   :  { %280 = vsyncpa [#allocation6], 1 }
 0x139   :  { %281 = vsyncpa [#allocation9], 1 }
 0x13a   :  { %282 = vsyncpa [#allocation4], 1 }

</bundles_post_ra>
